<compile_context>
chip_gen: v6e
topology: v6e:2x2x1
jax: 0.10.0
libtpu: 0.0.40
codegen_flags: <defaults>
</compile_context>

<pallas_src>
import functools

import jax
import jax.numpy as jnp
import numpy as np
from jax import lax
from jax.experimental import pallas as pl
from jax.experimental.pallas import tpu as pltpu


def _dwconv_kernel(tap_ref, params_ref, x_ref, o_ref, xpad_ref, *, H, W, pad, act):
    # tap_ref   : (6, H*W) VMEM  -- lane profiles (weight * column-valid mask) for dj != 0
    # params_ref: (4,)     SMEM  -- [w(-1,0), w(0,0), w(+1,0), bias]
    # x_ref     : (B, H*W) VMEM  -- B flattened channel images
    # o_ref     : (B, H*W) VMEM  -- output block
    # xpad_ref  : (B, H*W + 2*pad) VMEM scratch -- zero-haloed staging buffer
    HW = H * W
    B = o_ref.shape[0]

    # Stage the block into the zero-haloed scratch.  The zero halos provide the
    # top/bottom (row) padding of the SAME conv.  Re-zeroed every step so the
    # grid axis stays safely "parallel" (megacore-shardable).
    xpad_ref[:, :pad] = jnp.zeros((B, pad), jnp.float32)
    xpad_ref[:, pad + HW:] = jnp.zeros((B, xpad_ref.shape[1] - pad - HW), jnp.float32)
    xpad_ref[:, pad:pad + HW] = x_ref[...].astype(jnp.float32)

    # Accumulator starts at the bias (saves a separate full-block add at the end).
    acc = jnp.full((B, HW), params_ref[3], jnp.float32)

    # 3x3 conv as 9 statically-shifted flat reads.  dj == 0 taps use a plain
    # scalar weight (no mask needed); dj != 0 taps use the precomputed
    # (weight * column-mask) lane profile.  All VPU work on lane-dense vregs.
    t = 0
    for di in (-1, 0, 1):
        for dj in (-1, 0, 1):
            s = di * W + dj
            xs = xpad_ref[:, pad + s:pad + s + HW]
            if dj == 0:
                acc = acc + params_ref[di + 1] * xs
            else:
                prof = tap_ref[t:t + 1, :]               # (1, HW), broadcasts over B
                acc = acc + prof * xs
                t += 1

    if act:
        acc = jnp.maximum(acc, 0.0)
    o_ref[...] = acc.astype(o_ref.dtype)


def depthwise_conv_forward(x, weight, bias, act=False):
    """x: (N, C, H, W) float32, weight: (3, 3), bias: (1,). Returns (N, C, H, W)."""
    N, C, H, W = x.shape
    NC = N * C
    HW = H * W

    # Flat channels-x-pixels view: free reshape of a contiguous NCHW array.
    xf = x.reshape(NC, HW)

    # Halo offset inside the VMEM scratch (128-aligned interior, >= W+1 zeros each side).
    PAD = ((W + 1 + 127) // 128) * 128

    # --- Channels per grid step (B) ---------------------------------------
    # VMEM per step ~= 4B * B * (2*HW in + 2*HW out + (HW + 2*PAD) scratch); keep
    # well under v7x's scoped VMEM (the tightest of the three generations).
    budget = 24 * 1024 * 1024
    per_row = 4 * (5 * HW + 2 * PAD)
    B = int(budget // per_row)
    B = max(8, min(B, 1024))
    B = (B // 8) * 8
    if NC > 8:
        # Keep at least 2 grid steps so both v7x TensorCores get work.
        B = min(B, ((NC + 1) // 2 + 7) // 8 * 8)
    if B > NC:
        B = ((NC + 7) // 8) * 8
    num_blocks = (NC + B - 1) // B
    NCp = num_blocks * B
    if NCp != NC:
        xf = jnp.pad(xf, ((0, NCp - NC), (0, 0)))

    # --- Per-tap lane profiles for dj != 0: weight * column-validity mask ----
    # (left/right image borders; top/bottom handled by the zero halo)
    col = jnp.arange(HW, dtype=jnp.int32) % W
    profs = []
    for di in (-1, 0, 1):
        for dj in (-1, 1):
            ok = jnp.logical_and(col + dj >= 0, col + dj <= W - 1)
            profs.append(weight[di + 1, dj + 1].astype(jnp.float32) * ok.astype(jnp.float32))
    tap_profiles = jnp.stack(profs, axis=0)  # (6, HW)

    # Scalars for the dj == 0 taps + bias, read from SMEM inside the kernel.
    params = jnp.concatenate(
        [weight[:, 1].astype(jnp.float32), bias.astype(jnp.float32)])  # (4,)

    kernel = functools.partial(_dwconv_kernel, H=H, W=W, pad=PAD, act=act)
    out = pl.pallas_call(
        kernel,
        out_shape=jax.ShapeDtypeStruct((NCp, HW), x.dtype),
        grid=(num_blocks,),
        in_specs=[
            pl.BlockSpec((6, HW), lambda n: (0, 0)),                # tap profiles (VMEM, tiny)
            pl.BlockSpec(memory_space=pltpu.MemorySpace.SMEM),      # [w(.,0) x3, bias]
            pl.BlockSpec((B, HW), lambda n: (n, 0)),                # B channel images
        ],
        out_specs=pl.BlockSpec((B, HW), lambda n: (n, 0)),
        scratch_shapes=[pltpu.VMEM((B, HW + 2 * PAD), jnp.float32)],
        compiler_params=pltpu.CompilerParams(
            dimension_semantics=("parallel",),
            vmem_limit_bytes=32 * 1024 * 1024,
        ),
    )(tap_profiles, params, xf)

    return out[:NC].reshape(N, C, H, W)


def _reference(x, weight, bias, act=False):
    """Independent reference using lax.conv (mirrors the PyTorch forward)."""
    N, C, H, W = x.shape
    xr = x.reshape(N * C, 1, H, W)
    wr = weight.reshape(1, 1, 3, 3)
    y = lax.conv_general_dilated(
        xr, wr, window_strides=(1, 1), padding="SAME",
        dimension_numbers=("NCHW", "OIHW", "NCHW"))
    y = y + bias[0]
    if act:
        y = jnp.maximum(y, 0.0)
    return y.reshape(N, C, H, W)


if __name__ == "__main__":
    key = jax.random.PRNGKey(0)
    k_x, k_w, k_b = jax.random.split(key, 3)

    # Small shapes consistent with the module's forward: NCHW input.
    N, C, H, W = 2, 4, 16, 16
    x = jax.random.normal(k_x, (N, C, H, W), dtype=jnp.float32)

    # Deterministic synthetic Conv2d(1, 1, 3) parameters (PyTorch-like scale).
    fan_in = 1 * 3 * 3
    bound = 1.0 / np.sqrt(fan_in)
    weight = jax.random.uniform(k_w, (3, 3), jnp.float32, -bound, bound)
    bias = jax.random.uniform(k_b, (1,), jnp.float32, -bound, bound)

    out = depthwise_conv_forward(x, weight, bias)
    out = jax.block_until_ready(out)

    ref = _reference(x, weight, bias)
    np.testing.assert_allclose(np.asarray(out), np.asarray(ref),
                               rtol=1e-5, atol=1e-5)

    print("KERNEL_OK")
</pallas_src>

<mosaic_0001>
module attributes {stable_mosaic.version = 11 : i64} {
  func.func @_dwconv_kernel(%arg0: i32, %arg1: memref<6x256xf32, #tpu.memory_space<vmem>>, %arg2: memref<4xf32, #tpu.memory_space<smem>>, %arg3: memref<8x256xf32, #tpu.memory_space<vmem>>, %arg4: memref<8x256xf32, #tpu.memory_space<vmem>>, %arg5: memref<8x512xf32, #tpu.memory_space<vmem>>) attributes {dimension_semantics = [#tpu.dimension_semantics<parallel>], iteration_bounds = array<i64: 1>, scalar_prefetch = 0 : i64, scratch_operands = 1 : i64, tpu.core_type = #tpu.core_type<tc>, window_params = [{pipeline_mode = #tpu.pipeline_mode<synchronous>, transform_indices = @transform_0, window_bounds = array<i64: 6, 256>}, {transform_indices = @transform_1, window_bounds = array<i64: 4>}, {transform_indices = @transform_2, window_bounds = array<i64: 8, 256>}, {transform_indices = @transform_3, window_bounds = array<i64: 8, 256>}]} {
    %cst = arith.constant 0.000000e+00 : f32
    %0 = vector.broadcast %cst : f32 to vector<8x128xf32>
    %c0 = arith.constant 0 : index
    %c0_0 = arith.constant 0 : index
    %1 = vector.load %arg5[%c0, %c0_0] : memref<8x512xf32, #tpu.memory_space<vmem>>, vector<8x128xf32>
    tpu.vector_store %arg5[%c0, %c0_0], %0 {strides = array<i32>} : memref<8x512xf32, #tpu.memory_space<vmem>>, vector<8x128xf32>,
    %cst_1 = arith.constant 0.000000e+00 : f32
    %2 = vector.broadcast %cst_1 : f32 to vector<8x128xf32>
    %c0_2 = arith.constant 0 : index
    %c384 = arith.constant 384 : index
    %3 = vector.load %arg5[%c0_2, %c384] : memref<8x512xf32, #tpu.memory_space<vmem>>, vector<8x128xf32>
    tpu.vector_store %arg5[%c0_2, %c384], %2 {strides = array<i32>} : memref<8x512xf32, #tpu.memory_space<vmem>>, vector<8x128xf32>,
    %c0_3 = arith.constant 0 : index
    %c0_4 = arith.constant 0 : index
    %4 = vector.load %arg3[%c0_3, %c0_4] : memref<8x256xf32, #tpu.memory_space<vmem>>, vector<8x256xf32>
    %c0_5 = arith.constant 0 : index
    %c128 = arith.constant 128 : index
    %5 = vector.load %arg5[%c0_5, %c128] : memref<8x512xf32, #tpu.memory_space<vmem>>, vector<8x256xf32>
    tpu.vector_store %arg5[%c0_5, %c128], %4 {strides = array<i32>} : memref<8x512xf32, #tpu.memory_space<vmem>>, vector<8x256xf32>,
    %c3 = arith.constant 3 : index
    %6 = memref.load %arg2[%c3] : memref<4xf32, #tpu.memory_space<smem>>
    %7 = vector.broadcast %6 : f32 to vector<8x256xf32>
    %c0_6 = arith.constant 0 : index
    %c111 = arith.constant 111 : index
    %8 = vector.load %arg5[%c0_6, %c111] : memref<8x512xf32, #tpu.memory_space<vmem>>, vector<8x256xf32>
    %c0_7 = arith.constant 0 : index
    %c0_8 = arith.constant 0 : index
    %9 = vector.load %arg1[%c0_7, %c0_8] : memref<6x256xf32, #tpu.memory_space<vmem>>, vector<1x256xf32>
    %10 = vector.broadcast %9 : vector<1x256xf32> to vector<8x256xf32>
    %11 = arith.mulf %10, %8 : vector<8x256xf32>
    %12 = arith.addf %7, %11 : vector<8x256xf32>
    %c0_9 = arith.constant 0 : index
    %c112 = arith.constant 112 : index
    %13 = vector.load %arg5[%c0_9, %c112] : memref<8x512xf32, #tpu.memory_space<vmem>>, vector<8x256xf32>
    %c0_10 = arith.constant 0 : index
    %14 = memref.load %arg2[%c0_10] : memref<4xf32, #tpu.memory_space<smem>>
    %15 = vector.broadcast %14 : f32 to vector<8x256xf32>
    %16 = arith.mulf %15, %13 : vector<8x256xf32>
    %17 = arith.addf %12, %16 : vector<8x256xf32>
    %c0_11 = arith.constant 0 : index
    %c113 = arith.constant 113 : index
    %18 = vector.load %arg5[%c0_11, %c113] : memref<8x512xf32, #tpu.memory_space<vmem>>, vector<8x256xf32>
    %c1 = arith.constant 1 : index
    %c0_12 = arith.constant 0 : index
    %19 = vector.load %arg1[%c1, %c0_12] : memref<6x256xf32, #tpu.memory_space<vmem>>, vector<1x256xf32>
    %20 = vector.broadcast %19 : vector<1x256xf32> to vector<8x256xf32>
    %21 = arith.mulf %20, %18 : vector<8x256xf32>
    %22 = arith.addf %17, %21 : vector<8x256xf32>
    %c0_13 = arith.constant 0 : index
    %c127 = arith.constant 127 : index
    %23 = vector.load %arg5[%c0_13, %c127] : memref<8x512xf32, #tpu.memory_space<vmem>>, vector<8x256xf32>
    %c2 = arith.constant 2 : index
    %c0_14 = arith.constant 0 : index
    %24 = vector.load %arg1[%c2, %c0_14] : memref<6x256xf32, #tpu.memory_space<vmem>>, vector<1x256xf32>
    %25 = vector.broadcast %24 : vector<1x256xf32> to vector<8x256xf32>
    %26 = arith.mulf %25, %23 : vector<8x256xf32>
    %27 = arith.addf %22, %26 : vector<8x256xf32>
    %c0_15 = arith.constant 0 : index
    %c128_16 = arith.constant 128 : index
    %28 = vector.load %arg5[%c0_15, %c128_16] : memref<8x512xf32, #tpu.memory_space<vmem>>, vector<8x256xf32>
    %c1_17 = arith.constant 1 : index
    %29 = memref.load %arg2[%c1_17] : memref<4xf32, #tpu.memory_space<smem>>
    %30 = vector.broadcast %29 : f32 to vector<8x256xf32>
    %31 = arith.mulf %30, %28 : vector<8x256xf32>
    %32 = arith.addf %27, %31 : vector<8x256xf32>
    %c0_18 = arith.constant 0 : index
    %c129 = arith.constant 129 : index
    %33 = vector.load %arg5[%c0_18, %c129] : memref<8x512xf32, #tpu.memory_space<vmem>>, vector<8x256xf32>
    %c3_19 = arith.constant 3 : index
    %c0_20 = arith.constant 0 : index
    %34 = vector.load %arg1[%c3_19, %c0_20] : memref<6x256xf32, #tpu.memory_space<vmem>>, vector<1x256xf32>
    %35 = vector.broadcast %34 : vector<1x256xf32> to vector<8x256xf32>
    %36 = arith.mulf %35, %33 : vector<8x256xf32>
    %37 = arith.addf %32, %36 : vector<8x256xf32>
    %c0_21 = arith.constant 0 : index
    %c143 = arith.constant 143 : index
    %38 = vector.load %arg5[%c0_21, %c143] : memref<8x512xf32, #tpu.memory_space<vmem>>, vector<8x256xf32>
    %c4 = arith.constant 4 : index
    %c0_22 = arith.constant 0 : index
    %39 = vector.load %arg1[%c4, %c0_22] : memref<6x256xf32, #tpu.memory_space<vmem>>, vector<1x256xf32>
    %40 = vector.broadcast %39 : vector<1x256xf32> to vector<8x256xf32>
    %41 = arith.mulf %40, %38 : vector<8x256xf32>
    %42 = arith.addf %37, %41 : vector<8x256xf32>
    %c0_23 = arith.constant 0 : index
    %c144 = arith.constant 144 : index
    %43 = vector.load %arg5[%c0_23, %c144] : memref<8x512xf32, #tpu.memory_space<vmem>>, vector<8x256xf32>
    %c2_24 = arith.constant 2 : index
    %44 = memref.load %arg2[%c2_24] : memref<4xf32, #tpu.memory_space<smem>>
    %45 = vector.broadcast %44 : f32 to vector<8x256xf32>
    %46 = arith.mulf %45, %43 : vector<8x256xf32>
    %47 = arith.addf %42, %46 : vector<8x256xf32>
    %c0_25 = arith.constant 0 : index
    %c145 = arith.constant 145 : index
    %48 = vector.load %arg5[%c0_25, %c145] : memref<8x512xf32, #tpu.memory_space<vmem>>, vector<8x256xf32>
    %c5 = arith.constant 5 : index
    %c0_26 = arith.constant 0 : index
    %49 = vector.load %arg1[%c5, %c0_26] : memref<6x256xf32, #tpu.memory_space<vmem>>, vector<1x256xf32>
    %50 = vector.broadcast %49 : vector<1x256xf32> to vector<8x256xf32>
    %51 = arith.mulf %50, %48 : vector<8x256xf32>
    %52 = arith.addf %47, %51 : vector<8x256xf32>
    %c0_27 = arith.constant 0 : index
    %c0_28 = arith.constant 0 : index
    %53 = vector.load %arg4[%c0_27, %c0_28] : memref<8x256xf32, #tpu.memory_space<vmem>>, vector<8x256xf32>
    tpu.vector_store %arg4[%c0_27, %c0_28], %52 {strides = array<i32>} : memref<8x256xf32, #tpu.memory_space<vmem>>, vector<8x256xf32>,
    return
  }
  func.func @transform_0(%arg0: i32) -> (i32, i32) {
    %c0_i32 = arith.constant 0 : i32
    %c0_i32_0 = arith.constant 0 : i32
    %c0_i32_1 = arith.constant 0 : i32
    return %c0_i32, %c0_i32_0 : i32, i32
  }
  func.func @transform_1(%arg0: i32) -> i32 {
    %c0_i32 = arith.constant 0 : i32
    %c0_i32_0 = arith.constant 0 : i32
    return %c0_i32 : i32
  }
  func.func @transform_2(%arg0: i32) -> (i32, i32) {
    %c0_i32 = arith.constant 0 : i32
    %c0_i32_0 = arith.constant 0 : i32
    return %arg0, %c0_i32 : i32, i32
  }
  func.func @transform_3(%arg0: i32) -> (i32, i32) {
    %c0_i32 = arith.constant 0 : i32
    %c0_i32_0 = arith.constant 0 : i32
    return %arg0, %c0_i32 : i32, i32
  }
}

</mosaic_0001>

<bundles_post_ra>
// kernel: tpu_custom_call.1
= control target key start
LH: loop header
LB: loop body
LE: loop exit
PB: predicated region body
PF: predicated region fallthrough
CT: control target
= control target key end

     0   :  { %8 = vsyncpa [#allocation4], 0  ;;  %s495_s0 = inlined_call_operand.hbm [shape: f32[6,256], index: 0, kind: input, shape index: {}]   ;;  %s496_s1 = inlined_call_operand.vmem [shape: f32[4], index: 1, kind: input, shape index: {}]   ;;  %s497_s2 = inlined_call_operand.hbm [shape: f32[8,256], index: 2, kind: input, shape index: {}]   ;;  %s498_s3 = inlined_call_operand.hbm [shape: f32[8,256], index: 3, kind: output, shape index: {}]  }
   0x1   :  { %9 = vsyncpa [#allocation6], 0 }
   0x2   :  { %10 = vsyncpa [#allocation9], 0 }
   0x3   :  { %11 = vsyncpa [#allocation5], 0  ;;  %s28_s14 = sshll.u32 %s496_s1, 4  ;;  %s402_s15 = smov [#allocation3]   ;;  %s29_s14 = int_to_ptr.vmem [resolvable:$true] %s28_s14 }
   0x4   :  { %s18_s16 = sshll.u32 %s402_s15, 4  ;;  %s19_s16 = int_to_ptr.vmem [resolvable:$true] %s18_s16 }
   0x5   :  { %s330_s17 = scalar_lea.vmem %s19_s16, 256  ;;  %p335_p1 = scmp.lt.s32.totalorder %s19_s16, %s19_s16 }
   0x6   :  { %p331_p0 = scmp.ne.s32.totalorder %s19_s16, %s330_s17  ;;  %p336_p2 = scmp.lt.s32.totalorder %s330_s17, %s330_s17 }
   0x8   :  { %p337_p3 = por %p336_p2, %p335_p1 }
   0xa   :  { %p338_p4 = pnand %p337_p3, %p331_p0 }
   0xc   :  { %341 = shalt.err (!%p338_p4)
}
   0xd   :  { %21 = dma.hbm_to_vmem [thread:$0]  %s495_s0, 256, %s19_s16, [#allocation4]  }
   0xe   :  { %s342_s20 = scalar_lea.vmem %s29_s14, 16  ;;  %p347_p6 = scmp.lt.s32.totalorder %s29_s14, %s29_s14 }
   0xf   :  { %p343_p5 = scmp.ne.s32.totalorder %s29_s14, %s342_s20  ;;  %p348_p7 = scmp.lt.s32.totalorder %s342_s20, %s342_s20 }
  0x11   :  { %p349_p8 = por %p348_p7, %p347_p6 }
  0x13   :  { %p350_p9 = pnand %p349_p8, %p343_p5 }
  0x15   :  { %353 = shalt.err (!%p350_p9)
}
  0x16   :  { %s403_s1 = smov [#allocation7]   ;;  %s404_s21 = smov [#allocation8]  }
  0x17   :  { %31 = dma.vmem_to_smem %s29_s14, 16, %s403_s1, [#allocation6]  }
  0x18   :  { %s38_s22 = sshll.u32 %s404_s21, 4  ;;  %s39_s22 = int_to_ptr.vmem [resolvable:$true] %s38_s22 }
  0x19   :  { %s362_s23 = scalar_lea.vmem %s39_s22, 256  ;;  %p367_p11 = scmp.lt.s32.totalorder %s39_s22, %s39_s22 }
  0x1a   :  { %p363_p10 = scmp.ne.s32.totalorder %s39_s22, %s362_s23  ;;  %p368_p12 = scmp.lt.s32.totalorder %s362_s23, %s362_s23 }
  0x1c   :  { %p369_p13 = por %p368_p12, %p367_p11 }
  0x1e   :  { %p370_p0 = pnand %p369_p13, %p363_p10 }
  0x20   :  { %373 = shalt.err (!%p370_p0)
}
  0x21   :  { %41 = dma.hbm_to_vmem [thread:$0]  %s497_s2, 256, %s39_s22, [#allocation9]  }
  0x22   :  { %394 = dma.done.wait [#allocation4], 256  }
  0x23   :  { %395 = vsyncadd [#allocation4], 4294967040 }
  0x24   :  { %396 = dma.done.wait [#allocation6], 16  }
  0x25   :  { %397 = vsyncadd [#allocation6], 4294967280 }
  0x26   :  { %398 = dma.done.wait [#allocation9], 256  }
  0x27   :  { %399 = vsyncadd [#allocation9], 4294967040 }
  0x28   :  { %51 = sfence }
  0x29   :  { %v444_v0 = vld [vmem:[#allocation8 + $0x8] sm:$0xff]  ;;  %s93_s25 = sld [smem:[#allocation7]]  ;;  %v405_v1 = vmov 0.0   ;;  %s406_s26 = smov 17   ;;  %v447_v2 = vld [vmem:[#allocation8] sm:$0xff]  ;;  %v65_v14 = vlaneseq  ;;  %vm84_vm0 = vcmask 138240  }
  0x2a   :  { %78 = vrot.lane.b32.xlu0 %v405_v1, %s406_s26  ;;  %82 = vrot.lane.b32.xlu1 %v444_v0, %s406_s26  ;;  %s407_s2 = smov 16   ;;  %s408_s27 = smov 15   ;;  %v63_v23 = vld [vmem:[#allocation3] ss:$8 sm:$0x3]  ;;  %vm133_vm1 = vcmask 121856  }
  0x2b   :  { %s409_s28 = smov 1   ;;  %s308_s29 = sld [smem:[#allocation7 + $0x2]]  ;;  %v66_v17 = vshrl.u32 %v65_v14, 7  ;;  %v115_v31 = vld [vmem:[#allocation3 + $0x1] ss:$8 sm:$0x3] }
  0x2c   :  { %s410_s30 = smov 127   ;;  %s411_s4 = smov 113   ;;  %vm107_vm2 = vcmask 130048   ;;  %v143_v36 = vld [vmem:[#allocation3 + $0x2] ss:$8 sm:$0x3] }
  0x2d   :  { %s412_s5 = smov 112   ;;  %s413_s6 = smov 111   ;;  %v464_v20 = vsub.s32 0, %v66_v17  ;;  %v468_v24 = vsub.s32 1, %v66_v17  ;;  %vm161_vm3 = vcmask 7168   ;;  %vm201_vm4 = vcmask 1039360  }
  0x2e   :  { %80 = vrot.lane.b32.xlu0 %v447_v2, %s406_s26  ;;  %s466_s7 = sld [smem:[#allocation7 + $0x3]]  ;;  %v180_v55 = vld [vmem:[#allocation3 + $0x3] ss:$8 sm:$0x3]  ;;  %vm229_vm5 = vcmask 924672   ;;  %vm252_vm6 = vcmask 916480  }
  0x2f   :  { %v94_v3 = vstv %s93_s25  ;;  %v68_v25 = vrot.slane %v63_v23, %v464_v20  ;;  %v72_v29 = vrot.slane %v63_v23, %v468_v24  ;;  %s472_s8 = sld [smem:[#allocation7 + $0x1]]  ;;  %v120_v38 = vrot.slane %v115_v31, %v464_v20  ;;  %v211_v62 = vld [vmem:[#allocation3 + $0x4] ss:$8 sm:$0x3]  ;;  %s414_s9 = smov [#allocation10]  }
  0x30   :  { %v95_v4 = vmul.f32 0.0, %v94_v3  ;;  %v96_v5 = vmul.f32 %v94_v3, %v447_v2  ;;  %v97_v6 = vmul.f32 %v94_v3, %v444_v0  ;;  %v124_v39 = vrot.slane %v115_v31, %v468_v24  ;;  %s295_s10 = sshll.u32 %s414_s9, 4  ;;  %s296_s10 = int_to_ptr.vmem [resolvable:$true] %s295_s10 }
  0x31   :  { %v239_v7 = vstv %s308_s29  ;;  %v148_v43 = vrot.slane %v143_v36, %v464_v20  ;;  %v152_v44 = vrot.slane %v143_v36, %v468_v24  ;;  %v185_v3 = vrot.slane %v180_v55, %v464_v20  ;;  %s374_s11 = scalar_lea.vmem %s296_s10, 256  ;;  %p379_p2 = scmp.lt.s32.totalorder %s296_s10, %s296_s10 }
  0x32   :  { %101 = vrot.lane.b32.xlu1 %v95_v4, %s407_s2  ;;  %103 = vrot.lane.b32.xlu0 %v96_v5, %s407_s2  ;;  %v240_v8 = vmul.f32 %v239_v7, %v447_v2  ;;  %v241_v9 = vmul.f32 %v239_v7, %v444_v0  ;;  %v242_v10 = vmul.f32 0.0, %v239_v7  ;;  %vm278_vm7 = vcmask 908288   ;;  %p375_p1 = scmp.ne.s32.totalorder %s296_s10, %s374_s11  ;;  %p380_p3 = scmp.lt.s32.totalorder %s374_s11, %s374_s11 }
  0x34   :  { %v59_v35 = vstv %s466_s7  ;;  %p381_p4 = por %p380_p3, %p379_p2 }
  0x35   :  { %v171_v54 = vstv %s472_s8 }
  0x36   :  { %105 = vrot.lane.b32.xlu1 %v97_v6, %s407_s2  ;;  %127 = vrot.lane.b32.xlu0 %v405_v1, %s408_s27  ;;  %v172_v4 = vmul.f32 %v171_v54, %v447_v2  ;;  %v173_v6 = vmul.f32 %v171_v54, %v444_v0  ;;  %p382_p5 = pnand %p381_p4, %p375_p1 }
  0x3a   :  { %129 = vrot.lane.b32.xlu1 %v447_v2, %s408_s27  ;;  %131 = vrot.lane.b32.xlu0 %v444_v0, %s408_s27 }
  0x3e   :  { %155 = vrot.lane.b32.xlu1 %v405_v1, %s409_s28  ;;  %157 = vrot.lane.b32.xlu0 %v447_v2, %s409_s28 }
  0x42   :  { %159 = vrot.lane.b32.xlu1 %v444_v0, %s409_s28  ;;  %195 = vrot.lane.b32.xlu0 %v447_v2, %s410_s30 }
  0x46   :  { %197 = vrot.lane.b32.xlu1 %v444_v0, %s410_s30  ;;  %199 = vrot.lane.b32.xlu0 %v405_v1, %s410_s30 }
  0x4a   :  { %223 = vrot.lane.b32.xlu1 %v447_v2, %s411_s4  ;;  %225 = vrot.lane.b32.xlu0 %v444_v0, %s411_s4 }
  0x4e   :  { %227 = vrot.lane.b32.xlu1 %v405_v1, %s411_s4  ;;  %246 = vrot.lane.b32.xlu0 %v240_v8, %s412_s5 }
  0x52   :  { %248 = vrot.lane.b32.xlu1 %v241_v9, %s412_s5  ;;  %250 = vrot.lane.b32.xlu0 %v242_v10, %s412_s5  ;;  %v189_v9 = vrot.slane %v180_v55, %v468_v24  ;;  %v216_v10 = vrot.slane %v211_v62, %v464_v20 }
  0x56   :  { %272 = vrot.lane.b32.xlu1 %v447_v2, %s413_s6  ;;  %274 = vrot.lane.b32.xlu0 %v444_v0, %s413_s6  ;;  %v260_v2 = vld [vmem:[#allocation3 + $0x5] ss:$8 sm:$0x3] }
  0x5a   :  { %276 = vrot.lane.b32.xlu1 %v405_v1, %s413_s6 }
  0x9c   :  { %v79_v11 = vpop.permute.xlu0 %78  ;;  %v83_v12 = vpop.permute.xlu1 %82 }
  0xa0   :  { %v81_v13 = vpop.permute.xlu0 %80 }
  0xa1   :  { %v85_v28 = vsel %vm84_vm0, %v79_v11, %v81_v13  ;;  %v86_v30 = vsel %vm84_vm0, %v81_v13, %v83_v12 }
  0xa2   :  { %v89_v32 = vmul.f32 %v85_v28, %v68_v25  ;;  %v90_v37 = vmul.f32 %v86_v30, %v72_v29 }
  0xa4   :  { %v102_v15 = vpop.permute.xlu1 %101  ;;  %v104_v16 = vpop.permute.xlu0 %103  ;;  %v91_v42 = vadd.f32 %v89_v32, %v59_v35  ;;  %v92_v51 = vadd.f32 %v90_v37, %v59_v35  ;;  %v269_v37 = vrot.slane %v260_v2, %v468_v24 }
  0xa5   :  { %v108_v47 = vsel %vm107_vm2, %v102_v15, %v104_v16 }
  0xa6   :  { %v112_v56 = vadd.f32 %v108_v47, %v91_v42 }
  0xa8   :  { %v106_v18 = vpop.permute.xlu1 %105  ;;  %v128_v19 = vpop.permute.xlu0 %127 }
  0xa9   :  { %v109_v48 = vsel %vm107_vm2, %v104_v16, %v106_v18  ;;  %v220_v16 = vrot.slane %v211_v62, %v468_v24 }
  0xaa   :  { %v113_v57 = vadd.f32 %v109_v48, %v92_v51 }
  0xac   :  { %v130_v21 = vpop.permute.xlu1 %129  ;;  %v132_v22 = vpop.permute.xlu0 %131 }
  0xad   :  { %v134_v40 = vsel %vm133_vm1, %v128_v19, %v130_v21  ;;  %v135_v41 = vsel %vm133_vm1, %v130_v21, %v132_v22 }
  0xae   :  { %v138_v52 = vmul.f32 %v134_v40, %v120_v38  ;;  %v139_v53 = vmul.f32 %v135_v41, %v124_v39 }
  0xb0   :  { %v156_v26 = vpop.permute.xlu1 %155  ;;  %v158_v27 = vpop.permute.xlu0 %157  ;;  %v140_v63 = vadd.f32 %v138_v52, %v112_v56  ;;  %v141_v1 = vadd.f32 %v139_v53, %v113_v57 }
  0xb1   :  { %v162_v49 = vsel %vm161_vm3, %v156_v26, %v158_v27 }
  0xb2   :  { %v166_v58 = vmul.f32 %v162_v49, %v148_v43 }
  0xb4   :  { %v160_v33 = vpop.permute.xlu1 %159  ;;  %v196_v34 = vpop.permute.xlu0 %195  ;;  %v168_v7 = vadd.f32 %v166_v58, %v140_v63 }
  0xb5   :  { %v163_v50 = vsel %vm161_vm3, %v158_v27, %v160_v33  ;;  %v265_v27 = vrot.slane %v260_v2, %v464_v20 }
  0xb6   :  { %v167_v59 = vmul.f32 %v163_v50, %v152_v44  ;;  %v174_v18 = vadd.f32 %v172_v4, %v168_v7 }
  0xb8   :  { %v198_v45 = vpop.permute.xlu1 %197  ;;  %v200_v46 = vpop.permute.xlu0 %199  ;;  %v169_v8 = vadd.f32 %v167_v59, %v141_v1 }
  0xb9   :  { %v202_v5 = vsel %vm201_vm4, %v196_v34, %v198_v45  ;;  %v203_v13 = vsel %vm201_vm4, %v198_v45, %v200_v46 }
  0xba   :  { %v206_v15 = vmul.f32 %v202_v5, %v185_v3  ;;  %v175_v19 = vadd.f32 %v173_v6, %v169_v8  ;;  %v207_v0 = vmul.f32 %v203_v13, %v189_v9 }
  0xbc   :  { %v224_v60 = vpop.permute.xlu1 %223  ;;  %v226_v61 = vpop.permute.xlu0 %225  ;;  %v208_v25 = vadd.f32 %v206_v15, %v174_v18  ;;  %v209_v29 = vadd.f32 %v207_v0, %v175_v19 }
  0xbd   :  { %v230_v14 = vsel %vm229_vm5, %v224_v60, %v226_v61 }
  0xbe   :  { %v234_v21 = vmul.f32 %v230_v14, %v216_v10 }
  0xc0   :  { %v228_v11 = vpop.permute.xlu1 %227  ;;  %v247_v12 = vpop.permute.xlu0 %246  ;;  %v236_v30 = vadd.f32 %v234_v21, %v208_v25 }
  0xc1   :  { %v231_v17 = vsel %vm229_vm5, %v226_v61, %v228_v11 }
  0xc2   :  { %v235_v26 = vmul.f32 %v231_v17, %v220_v16 }
  0xc4   :  { %v249_v22 = vpop.permute.xlu1 %248  ;;  %v251_v23 = vpop.permute.xlu0 %250  ;;  %v237_v35 = vadd.f32 %v235_v26, %v209_v29 }
  0xc5   :  { %v253_v28 = vsel %vm252_vm6, %v247_v12, %v249_v22  ;;  %v254_v38 = vsel %vm252_vm6, %v249_v22, %v251_v23 }
  0xc6   :  { %v257_v34 = vadd.f32 %v253_v28, %v236_v30  ;;  %v258_v20 = vadd.f32 %v254_v38, %v237_v35 }
  0xc8   :  { %v273_v31 = vpop.permute.xlu1 %272  ;;  %v275_v32 = vpop.permute.xlu0 %274 }
  0xc9   :  { %v279_v33 = vsel %vm278_vm7, %v273_v31, %v275_v32 }
  0xca   :  { %v283_v36 = vmul.f32 %v279_v33, %v265_v27 }
  0xcc   :  { %v277_v39 = vpop.permute.xlu1 %276  ;;  %v285_v40 = vadd.f32 %v283_v36, %v257_v34 }
  0xcd   :  { %v280_v41 = vsel %vm278_vm7, %v275_v32, %v277_v39 }
  0xce   :  { %v284_v42 = vmul.f32 %v280_v41, %v269_v37  ;;  %287 = vst [vmem:[#allocation10] sm:$0xff] %v285_v40 }
  0xd0   :  { %v286_v43 = vadd.f32 %v284_v42, %v258_v20 }
  0xd2   :  { %288 = vst [vmem:[#allocation10 + $0x8] sm:$0xff] %v286_v43 }
  0xd3   :  { %385 = shalt.err (!%p382_p5)
}
  0xd4   :  { %298 = dma.vmem_to_hbm [thread:$0]  %s296_s10, 256, %s498_s3, [#allocation5]  }
  0xd5   :  { %400 = dma.done.wait [#allocation5], 256  }
  0xd6   :  { %401 = vsyncadd [#allocation5], 4294967040 }
  0xd7   :  { %302 = vsyncpa [#allocation4], 1 }
  0xd8   :  { %303 = vsyncpa [#allocation9], 1 }
  0xd9   :  { %304 = vsyncpa [#allocation5], 1 }
  0xda   :  { %305 = vsyncpa [#allocation6], 1 }

</bundles_post_ra>
